<compile_context>
chip_gen: v6e
topology: v6e:2x2x1
jax: 0.10.0
libtpu: 0.0.40
codegen_flags: <defaults>
</compile_context>

<pallas_src>
import functools
import math

import jax
import jax.numpy as jnp
from jax.experimental import pallas as pl
from jax.experimental.pallas import tpu as pltpu

LANE = 128
DROPOUT_P = 0.1

# Chip-aware VMEM limit: 64 MiB on v5e/v6e (128 MiB physical), 48 MiB on v7x.
try:
    _VMEM_CAP = int(pltpu.get_tpu_info().vmem_capacity_bytes)
except Exception:  # pragma: no cover - conservative fallback
    _VMEM_CAP = 64 * 1024 * 1024
VMEM_LIMIT = min(64 * 1024 * 1024, max(32 * 1024 * 1024, (3 * _VMEM_CAP) // 4))

X_BUFFER_BYTES = 8 * 1024 * 1024       # per double/triple-buffered x tile
MAX_HW_TILE = 64 * LANE                # cap static unroll at 64 chunks


def _ceil_div(a, b):
    return -(-a // b)


def _make_kernel(training: bool, *, hw: int, hw_tile: int, bc_rows: int,
                 total_rows: int, ragged_hw: bool, ragged_rows: bool):
    """Builds the fused (pre-model stub -> dropout -> classifier) kernel."""
    n_chunks = hw_tile // LANE
    inv_keep = 1.0 / (1.0 - DROPOUT_P)
    drop_thresh = int(DROPOUT_P * (1 << 24))

    def _accumulate(x_ref, acc_ref):
        k = pl.program_id(1)

        @pl.when(k == 0)
        def _():
            acc_ref[...] = jnp.zeros_like(acc_ref)

        if ragged_hw:
            lane_iota = jax.lax.broadcasted_iota(jnp.int32, (bc_rows, LANE), 1)
            tile_col0 = k * hw_tile

        # Per-chunk load + f32 upcast (no full-tile f32 copy); VPU adds only.
        partial = None
        for c in range(n_chunks):                           # static unroll
            chunk = x_ref[:, c * LANE:(c + 1) * LANE].astype(jnp.float32)
            if ragged_hw:
                valid = hw - tile_col0 - c * LANE           # traced scalar
                chunk = jnp.where(lane_iota < valid, chunk, 0.0)
            partial = chunk if partial is None else partial + chunk
        acc_ref[...] += partial

    def _rowsum(acc_ref):
        rowsum = acc_ref[...].sum(axis=-1, keepdims=True)   # (bc_rows, 1) XLU
        if ragged_rows:
            # Zero rows that came from beyond B*C (stale VMEM could be NaN/Inf).
            row_iota = jax.lax.broadcasted_iota(jnp.int32, (bc_rows, 1), 0)
            valid = total_rows - pl.program_id(0) * bc_rows
            rowsum = jnp.where(row_iota < valid, rowsum, 0.0)
        return rowsum

    if not training:

        def kernel(seed_ref, x_ref, gb_ref, wfused_ref, bfused_ref, out_ref,
                   acc_ref):
            del seed_ref  # dropout is the identity in eval mode
            _accumulate(x_ref, acc_ref)

            @pl.when(pl.program_id(1) == pl.num_programs(1) - 1)
            def _():
                rowsum = _rowsum(acc_ref)
                # Gb (b_tile, bc_rows) @ (rowsum * Wexp) (bc_rows, nl_pad):
                # fused pre_model-projection + classifier (+ 1/HW scale).
                out_ref[...] = (
                    jnp.dot(gb_ref[...], rowsum * wfused_ref[...],
                            preferred_element_type=jnp.float32)
                    + bfused_ref[...]
                )

        return kernel

    def kernel(seed_ref, x_ref, gb_ref, wpre_ref, bpre_ref, wcls_ref, bcls_ref,
               out_ref, acc_ref):
        _accumulate(x_ref, acc_ref)

        @pl.when(pl.program_id(1) == pl.num_programs(1) - 1)
        def _():
            rowsum = _rowsum(acc_ref)
            feats = (
                jnp.dot(gb_ref[...], rowsum * wpre_ref[...],
                        preferred_element_type=jnp.float32)
                + bpre_ref[...]
            )                                               # (b_tile, P_pad)
            # nn.Dropout(0.1): per-batch-tile seed; integer-threshold compare
            # on raw bits (no float-uniform conversion).
            pltpu.prng_seed(seed_ref[0] + pl.program_id(0))
            bits = pltpu.prng_random_bits(feats.shape)
            keep = (bits & 0xFFFFFF) >= drop_thresh
            feats = jnp.where(keep, feats, 0.0) * inv_keep
            out_ref[...] = (
                jnp.dot(feats, wcls_ref[...], preferred_element_type=jnp.float32)
                + bcls_ref[...]
            )

    return kernel


@functools.partial(jax.jit, static_argnames=("training",))
def pretrained_classifier_forward(x, params, seed, *, training=False):
    """Forward pass.  x: (B, C, H, W), any float dtype (kept as-is in HBM)."""
    B, C, H, W = x.shape
    hw = H * W
    total_rows = B * C

    num_labels = params["w_cls"].shape[0]
    pre_labels = params["w_pre"].shape[0]

    # ---- batch tile ----------------------------------------------------------
    # Smallest b_tile whose (b_tile*C) rows are a multiple of 8 sublanes; grow
    # toward 256 rows but keep n_b >= 2 when B permits (v7x megacore split).
    b_tile = 8 // math.gcd(8, C)
    while (b_tile * 2 * C <= 256 and b_tile * 2 <= B
           and _ceil_div(B, b_tile * 2) >= 2):
        b_tile *= 2
    bc_rows = b_tile * C
    n_b = _ceil_div(B, b_tile)

    # ---- HW tile from byte budget (no lane cap beyond the unroll cap) -------
    itemsize = x.dtype.itemsize
    max_cols = max(LANE,
                   (X_BUFFER_BYTES // max(1, bc_rows * itemsize)) // LANE * LANE)
    hw_tile = min(_ceil_div(hw, LANE) * LANE, max_cols, MAX_HW_TILE)
    n_hw = _ceil_div(hw, hw_tile)
    nl_pad = max(LANE, _ceil_div(num_labels, LANE) * LANE)   # lane-dense output

    ragged_hw = (hw % hw_tile) != 0
    ragged_rows = (n_b * bc_rows) != total_rows

    # ---- input layout: pure reshape, NO host-side pad copy ------------------
    x2 = x.reshape(total_rows, hw)

    # ---- constant operands ---------------------------------------------------
    # Gb "unflattens" per-row pooled sums: Gb[b, r] = 1 iff r // C == b.
    rows = jnp.arange(bc_rows) // C
    gb = (rows[None, :] == jnp.arange(b_tile)[:, None]).astype(jnp.float32)

    w_pre_t = params["w_pre"].T                              # (C, P)
    w_cls_t = params["w_cls"].T                              # (P, NL)

    x_kwargs = {}
    if n_hw >= 3:
        x_kwargs["pipeline_mode"] = pl.Buffered(3)
    x_spec = pl.BlockSpec((bc_rows, hw_tile), lambda i, k, s: (i, k), **x_kwargs)
    gb_spec = pl.BlockSpec((b_tile, bc_rows), lambda i, k, s: (0, 0))
    # Squeezed leading dim => out block rows equal the full axis (no %8 rule).
    out_spec = pl.BlockSpec((None, b_tile, nl_pad), lambda i, k, s: (i, 0, 0))

    if not training:
        # Eval: dropout == identity -> fold both Linears (and 1/HW) together.
        w_fused = (w_pre_t @ w_cls_t) * (1.0 / hw)                  # (C, NL)
        b_fused = params["b_pre"] @ w_cls_t + params["b_cls"]       # (NL,)
        w_exp = jnp.pad(jnp.tile(w_fused, (b_tile, 1)),
                        ((0, 0), (0, nl_pad - num_labels)))          # (bc_rows, NLp)
        b_exp = jnp.pad(b_fused, (0, nl_pad - num_labels)).reshape(1, nl_pad)
        operands = (seed, x2, gb, w_exp, b_exp)
        in_specs = [x_spec, gb_spec,
                    pl.BlockSpec((bc_rows, nl_pad), lambda i, k, s: (0, 0)),
                    pl.BlockSpec((1, nl_pad), lambda i, k, s: (0, 0))]
    else:
        # Training: keep the two-matmul path (dropout in between); lane-dense P.
        p_pad = max(LANE, _ceil_div(pre_labels, LANE) * LANE)
        w_pre_exp = jnp.pad(jnp.tile(w_pre_t, (b_tile, 1)) * (1.0 / hw),
                            ((0, 0), (0, p_pad - pre_labels)))       # (bc_rows, Pp)
        b_pre = jnp.pad(params["b_pre"],
                        (0, p_pad - pre_labels)).reshape(1, p_pad)
        w_cls_p = jnp.pad(w_cls_t, ((0, p_pad - pre_labels),
                                    (0, nl_pad - num_labels)))       # (Pp, NLp)
        b_cls_p = jnp.pad(params["b_cls"],
                          (0, nl_pad - num_labels)).reshape(1, nl_pad)
        operands = (seed, x2, gb, w_pre_exp, b_pre, w_cls_p, b_cls_p)
        in_specs = [x_spec, gb_spec,
                    pl.BlockSpec((bc_rows, p_pad), lambda i, k, s: (0, 0)),
                    pl.BlockSpec((1, p_pad), lambda i, k, s: (0, 0)),
                    pl.BlockSpec((p_pad, nl_pad), lambda i, k, s: (0, 0)),
                    pl.BlockSpec((1, nl_pad), lambda i, k, s: (0, 0))]

    kernel = _make_kernel(training, hw=hw, hw_tile=hw_tile, bc_rows=bc_rows,
                          total_rows=total_rows, ragged_hw=ragged_hw,
                          ragged_rows=ragged_rows)

    out = pl.pallas_call(
        kernel,
        out_shape=jax.ShapeDtypeStruct((n_b, b_tile, nl_pad), jnp.float32),
        grid_spec=pltpu.PrefetchScalarGridSpec(
            num_scalar_prefetch=1,
            grid=(n_b, n_hw),
            in_specs=in_specs,
            out_specs=out_spec,
            scratch_shapes=[pltpu.VMEM((bc_rows, LANE), jnp.float32)],
        ),
        compiler_params=pltpu.CompilerParams(
            dimension_semantics=("parallel", "arbitrary"),
            vmem_limit_bytes=VMEM_LIMIT,
        ),
    )(*operands)

    return out.reshape(n_b * b_tile, nl_pad)[:B, :num_labels]


def init_params(key, in_channels, pre_num_labels, num_labels):
    """Deterministic parameter init (PyTorch Linear-style uniform bounds)."""
    k1, k2, k3, k4 = jax.random.split(key, 4)
    bound_pre = 1.0 / jnp.sqrt(in_channels)
    bound_cls = 1.0 / jnp.sqrt(pre_num_labels)
    return {
        # pre_model stub projection: (pre_num_labels, C)  (PyTorch (out, in))
        "w_pre": jax.random.uniform(
            k1, (pre_num_labels, in_channels), jnp.float32, -bound_pre, bound_pre
        ),
        "b_pre": jax.random.uniform(
            k2, (pre_num_labels,), jnp.float32, -bound_pre, bound_pre
        ),
        # classifier: (num_labels, pre_num_labels)
        "w_cls": jax.random.uniform(
            k3, (num_labels, pre_num_labels), jnp.float32, -bound_cls, bound_cls
        ),
        "b_cls": jax.random.uniform(
            k4, (num_labels,), jnp.float32, -bound_cls, bound_cls
        ),
    }


if __name__ == "__main__":
    B, C, H, W = 2, 4, 16, 16       # image input (NCHW)
    PRE_NUM_LABELS = 32             # model.config.num_labels of the pre_model
    NUM_LABELS = 8                  # new classifier head width

    key = jax.random.PRNGKey(0)
    kx, kp = jax.random.split(key)
    x = jax.random.normal(kx, (B, C, H, W), dtype=jnp.float32)
    params = init_params(kp, C, PRE_NUM_LABELS, NUM_LABELS)
    seed = jnp.zeros((1,), dtype=jnp.int32)

    # eval-mode forward (dropout == identity), as in typical inference use
    logits = pretrained_classifier_forward(x, params, seed, training=False)
    jax.block_until_ready(logits)

    # pure-JAX reference check
    pooled_ref = x.reshape(B, C, H * W).mean(-1)
    feats_ref = pooled_ref @ params["w_pre"].T + params["b_pre"]
    logits_ref = feats_ref @ params["w_cls"].T + params["b_cls"]
    assert logits.shape == (B, NUM_LABELS)
    assert jnp.allclose(logits, logits_ref, atol=1e-4, rtol=1e-4), float(
        jnp.max(jnp.abs(logits - logits_ref))
    )

    print("KERNEL_OK")
</pallas_src>

<mosaic_0001>
module attributes {stable_mosaic.version = 11 : i64} {
  func.func @kernel(%arg0: i32, %arg1: i32, %arg2: memref<1xi32, #tpu.memory_space<smem>>, %arg3: memref<8x256xf32, #tpu.memory_space<vmem>>, %arg4: memref<2x8xf32, #tpu.memory_space<vmem>>, %arg5: memref<8x128xf32, #tpu.memory_space<vmem>>, %arg6: memref<1x128xf32, #tpu.memory_space<vmem>>, %arg7: memref<1x2x128xf32, #tpu.memory_space<vmem>>, %arg8: memref<8x128xf32, #tpu.memory_space<vmem>>) attributes {dimension_semantics = [#tpu.dimension_semantics<parallel>, #tpu.dimension_semantics<arbitrary>], iteration_bounds = array<i64: 1, 1>, scalar_prefetch = 1 : i64, scratch_operands = 1 : i64, tpu.core_type = #tpu.core_type<tc>, window_params = [{transform_indices = @transform_0, window_bounds = array<i64: 8, 256>}, {pipeline_mode = #tpu.pipeline_mode<synchronous>, transform_indices = @transform_1, window_bounds = array<i64: 2, 8>}, {pipeline_mode = #tpu.pipeline_mode<synchronous>, transform_indices = @transform_2, window_bounds = array<i64: 8, 128>}, {pipeline_mode = #tpu.pipeline_mode<synchronous>, transform_indices = @transform_3, window_bounds = array<i64: 1, 128>}, {transform_indices = @transform_4, window_bounds = array<i64: 1, 2, 128>}]} {
    %c0_i32 = arith.constant 0 : i32
    %0 = arith.cmpi eq, %arg1, %c0_i32 : i32
    %1 = arith.extui %0 : i1 to i32
    %c0_i32_0 = arith.constant 0 : i32
    %2 = arith.cmpi ne, %1, %c0_i32_0 : i32
    scf.if %2 {
      %cst = arith.constant 0.000000e+00 : f32
      %12 = vector.broadcast %cst : f32 to vector<8x128xf32>
      %c0_9 = arith.constant 0 : index
      %c0_10 = arith.constant 0 : index
      %13 = vector.load %arg8[%c0_9, %c0_10] : memref<8x128xf32, #tpu.memory_space<vmem>>, vector<8x128xf32>
      tpu.vector_store %arg8[%c0_9, %c0_10], %12 {strides = array<i32>} : memref<8x128xf32, #tpu.memory_space<vmem>>, vector<8x128xf32>,
    } else {
    }
    %c0 = arith.constant 0 : index
    %c0_1 = arith.constant 0 : index
    %3 = vector.load %arg3[%c0, %c0_1] : memref<8x256xf32, #tpu.memory_space<vmem>>, vector<8x128xf32>
    %c0_2 = arith.constant 0 : index
    %c128 = arith.constant 128 : index
    %4 = vector.load %arg3[%c0_2, %c128] : memref<8x256xf32, #tpu.memory_space<vmem>>, vector<8x128xf32>
    %5 = arith.addf %3, %4 : vector<8x128xf32>
    %c0_3 = arith.constant 0 : index
    %c0_4 = arith.constant 0 : index
    %6 = vector.load %arg8[%c0_3, %c0_4] : memref<8x128xf32, #tpu.memory_space<vmem>>, vector<8x128xf32>
    %7 = arith.addf %6, %5 : vector<8x128xf32>
    %c0_5 = arith.constant 0 : index
    %c0_6 = arith.constant 0 : index
    %8 = vector.load %arg8[%c0_5, %c0_6] : memref<8x128xf32, #tpu.memory_space<vmem>>, vector<8x128xf32>
    tpu.vector_store %arg8[%c0_5, %c0_6], %7 {strides = array<i32>} : memref<8x128xf32, #tpu.memory_space<vmem>>, vector<8x128xf32>,
    %c0_i32_7 = arith.constant 0 : i32
    %9 = arith.cmpi eq, %arg1, %c0_i32_7 : i32
    %10 = arith.extui %9 : i1 to i32
    %c0_i32_8 = arith.constant 0 : i32
    %11 = arith.cmpi ne, %10, %c0_i32_8 : i32
    scf.if %11 {
      %c0_9 = arith.constant 0 : index
      %c0_10 = arith.constant 0 : index
      %12 = vector.load %arg8[%c0_9, %c0_10] : memref<8x128xf32, #tpu.memory_space<vmem>>, vector<8x128xf32>
      %cst = arith.constant dense<0.000000e+00> : vector<8xf32>
      %13 = vector.multi_reduction <add>, %12, %cst [1] : vector<8x128xf32> to vector<8xf32>
      %14 = vector.shape_cast %13 : vector<8xf32> to vector<8x1xf32>
      %c0_11 = arith.constant 0 : index
      %c0_12 = arith.constant 0 : index
      %15 = vector.load %arg4[%c0_11, %c0_12] : memref<2x8xf32, #tpu.memory_space<vmem>>, vector<2x8xf32>
      %c0_13 = arith.constant 0 : index
      %c0_14 = arith.constant 0 : index
      %16 = vector.load %arg5[%c0_13, %c0_14] : memref<8x128xf32, #tpu.memory_space<vmem>>, vector<8x128xf32>
      %17 = vector.broadcast %14 : vector<8x1xf32> to vector<8x128xf32>
      %18 = arith.mulf %17, %16 : vector<8x128xf32>
      %cst_15 = arith.constant dense<0.000000e+00> : vector<2x128xf32>
      %19 = tpu.matmul %15, %18, %cst_15 {dimension_numbers = #tpu.dot_dimension_numbers<[1], [0], [0], [1], [0, 0, 1, 1], [], []>} : vector<2x8xf32>, vector<8x128xf32>, vector<2x128xf32> -> vector<2x128xf32>
      %c0_16 = arith.constant 0 : index
      %c0_17 = arith.constant 0 : index
      %20 = vector.load %arg6[%c0_16, %c0_17] : memref<1x128xf32, #tpu.memory_space<vmem>>, vector<1x128xf32>
      %21 = vector.broadcast %20 : vector<1x128xf32> to vector<2x128xf32>
      %22 = arith.addf %19, %21 : vector<2x128xf32>
      %c0_18 = arith.constant 0 : index
      %c0_19 = arith.constant 0 : index
      %c0_20 = arith.constant 0 : index
      %23 = vector.load %arg7[%c0_18, %c0_19, %c0_20] : memref<1x2x128xf32, #tpu.memory_space<vmem>>, vector<1x2x128xf32>
      %24 = vector.shape_cast %23 : vector<1x2x128xf32> to vector<2x128xf32>
      %25 = vector.shape_cast %22 : vector<2x128xf32> to vector<1x2x128xf32>
      tpu.vector_store %arg7[%c0_18, %c0_19, %c0_20], %25 {strides = array<i32>} : memref<1x2x128xf32, #tpu.memory_space<vmem>>, vector<1x2x128xf32>,
    } else {
    }
    return
  }
  func.func @transform_0(%arg0: i32, %arg1: i32, %arg2: memref<1xi32, #tpu.memory_space<smem>>) -> (i32, i32) {
    %c0_i32 = arith.constant 0 : i32
    return %arg0, %arg1 : i32, i32
  }
  func.func @transform_1(%arg0: i32, %arg1: i32, %arg2: memref<1xi32, #tpu.memory_space<smem>>) -> (i32, i32) {
    %c0_i32 = arith.constant 0 : i32
    %c0_i32_0 = arith.constant 0 : i32
    %c0_i32_1 = arith.constant 0 : i32
    return %c0_i32, %c0_i32_0 : i32, i32
  }
  func.func @transform_2(%arg0: i32, %arg1: i32, %arg2: memref<1xi32, #tpu.memory_space<smem>>) -> (i32, i32) {
    %c0_i32 = arith.constant 0 : i32
    %c0_i32_0 = arith.constant 0 : i32
    %c0_i32_1 = arith.constant 0 : i32
    return %c0_i32, %c0_i32_0 : i32, i32
  }
  func.func @transform_3(%arg0: i32, %arg1: i32, %arg2: memref<1xi32, #tpu.memory_space<smem>>) -> (i32, i32) {
    %c0_i32 = arith.constant 0 : i32
    %c0_i32_0 = arith.constant 0 : i32
    %c0_i32_1 = arith.constant 0 : i32
    return %c0_i32, %c0_i32_0 : i32, i32
  }
  func.func @transform_4(%arg0: i32, %arg1: i32, %arg2: memref<1xi32, #tpu.memory_space<smem>>) -> (i32, i32, i32) {
    %c0_i32 = arith.constant 0 : i32
    %c0_i32_0 = arith.constant 0 : i32
    %c0_i32_1 = arith.constant 0 : i32
    return %arg0, %c0_i32, %c0_i32_0 : i32, i32, i32
  }
}

</mosaic_0001>

<bundles_post_ra>
// kernel: pretrained_classifier_forward.1
= control target key start
LH: loop header
LB: loop body
LE: loop exit
PB: predicated region body
PF: predicated region fallthrough
CT: control target
= control target key end

     0   :  { %s221_s0 = inlined_call_operand.<no memory space> [shape: s32[1], index: 0, kind: input, shape index: {}]   ;;  %s222_s1 = inlined_call_operand.vmem [shape: f32[8,256], index: 1, kind: input, shape index: {}]   ;;  %s223_s2 = inlined_call_operand.vmem [shape: f32[2,8], index: 2, kind: input, shape index: {}]   ;;  %s224_s3 = inlined_call_operand.vmem [shape: f32[8,128], index: 3, kind: input, shape index: {}]   ;;  %s225_s4 = inlined_call_operand.vmem [shape: f32[1,128], index: 4, kind: input, shape index: {}]   ;;  %s226_s5 = inlined_call_operand.hbm [shape: f32[1,2,128], index: 5, kind: output, shape index: {}]  }
   0x1   :  { %v25_v0 = vld [vmem:[%s222_s1] sm:$0xff]  ;;  %v26_v1 = vld [vmem:[%s222_s1 + $0x8] sm:$0xff] }
   0x2   :  { %11 = vsyncpa [#allocation6], 0  ;;  %v27_v2 = vadd.f32 %v26_v1, %v25_v0  ;;  %v170_v3 = vmov 0.0   ;;  %vm171_vm0 = vmmov 0   ;;  %v38_v4 = vld [vmem:[%s224_s3] sm:$0xff]  ;;  %vm47_vm1 = vcmask 64512  }
   0x3   :  { %140 = vmatprep.subr.mxu0 %v170_v3  ;;  %142 = vmatprep.mubr.msk.f32.mxu0 %vm171_vm0, %v170_v3  ;;  %v37_v7 = vld [vmem:[%s223_s2] sm:$0x3]  ;;  %s172_s26 = smov [#allocation5]  }
   0x4   :  { %35 = vadd.xlane.f32.xlu0 %v27_v2  ;;  %v136_v8 = vld [vmem:[%s225_s4] ss:$0 sm:$0xff]  ;;  %s128_s27 = sshll.u32 %s172_s26, 4  ;;  %s129_s27 = int_to_ptr.vmem [resolvable:$true] %s128_s27 }
   0x5   :  { %s148_s3 = scalar_lea.vmem %s129_s27, 32  ;;  %p153_p1 = scmp.lt.s32.totalorder %s129_s27, %s129_s27 }
   0x6   :  { %p149_p0 = scmp.ne.s32.totalorder %s129_s27, %s148_s3  ;;  %p154_p2 = scmp.lt.s32.totalorder %s148_s3, %s148_s3 }
   0x8   :  { %p155_p3 = por %p154_p2, %p153_p1 }
   0xa   :  { %p156_p4 = pnand %p155_p3, %p149_p0 }
  0x8d   :  { %v36_v5 = vpop.xlane.xlu0 %35 }
  0x8e   :  { %v39_v6 = vmul.f32 %v38_v4, %v36_v5 }
  0x90   :  { %141 = vmatpush3.msra.mxu0 %v39_v6 }
  0x91   :  { %143 = vmatmul.mubr.msk.f32.vlgmr.msra.gmra.mxu0 %vm47_vm1, %v37_v7 }
 0x151   :  { %v117_v9 = vpop.f32.mrf.mxu0 }
 0x152   :  { %v118_v10 = vadd.f32 %v136_v8, %v117_v9 }
 0x153   :  { %v144_v11 = vpop.f32.mrf.mxu0 }
 0x154   :  { %121 = vst [vmem:[#allocation5] sm:$0x3] %v118_v10 }
 0x155   :  { %159 = shalt.err (!%p156_p4)
}
 0x156   :  { %131 = dma.vmem_to_hbm [thread:$0]  %s129_s27, 32, %s226_s5, [#allocation6]  }
 0x157   :  { %168 = dma.done.wait [#allocation6], 32  }
 0x158   :  { %169 = vsyncadd [#allocation6], 4294967264 }
 0x159   :  { %135 = vsyncpa [#allocation6], 1 }

</bundles_post_ra>
